<compile_context>
chip_gen: v7x
topology: tpu7x:2x2x1
jax: 0.10.0
libtpu: 0.0.40
codegen_flags: <defaults>
</compile_context>

<pallas_src>
import functools

import jax
import jax.numpy as jnp
from jax.experimental import pallas as pl
from jax.experimental.pallas import tpu as pltpu

_LANE = 128


def _quantize_kernel(x_ref, o_ref):
    # Sign binarization: x >= 0 -> +1, x < 0 -> -1 (pure VPU, elementwise).
    x = x_ref[...]
    one = jnp.ones((), dtype=o_ref.dtype)
    o_ref[...] = jnp.where(x >= 0, one, -one)


@functools.lru_cache(maxsize=1)
def _chip_policy():
    """Returns (target_block_bytes, num_tensorcores, vmem_limit_bytes)."""
    kind = ""
    try:
        kind = jax.devices()[0].device_kind.lower()
    except Exception:
        pass
    if "v7" in kind:
        # ~3.2 TB/s HBM, 2 TCs, 64 MiB physical VMEM: 8 MiB blocks keep the
        # ~0.35 us per-step overhead <10%; 4 live buffers = 32 MiB, so raise
        # the scoped VMEM limit (default 32 MiB) to 48 MiB with headroom.
        return (8 << 20, 2, 48 << 20)
    if "v6" in kind:
        # 1 TC, 32 MiB default scoped VMEM: 4 MiB blocks -> 16 MiB live.
        return (4 << 20, 1, None)
    # v5e / unknown: 1 TC, 16 MiB default scoped VMEM: 2 MiB blocks -> 8 MiB.
    return (2 << 20, 1, None)


def _choose_tile_rows(rows: int, itemsize: int, target_bytes: int,
                      num_tc: int) -> int:
    """Block height (in 128-lane rows) for a streaming elementwise op."""
    # Largest multiple-of-32 row count whose block stays under target_bytes
    # (32 keeps sublane packing legal for f32/bf16/int8).
    max_tile = max(32, ((target_bytes // (_LANE * itemsize)) // 32) * 32)
    if rows > max_tile:
        return max_tile
    if num_tc >= 2:
        # Tensor fits one block on a multi-TC chip: split into >= 2 pipelined
        # steps per core so both TensorCores get work *and* DMA-in / compute /
        # DMA-out overlap is preserved on each core.
        min_steps = 2 * num_tc
        if rows >= 32 * min_steps:
            chunk = -(-rows // min_steps)          # ceil(rows / min_steps)
            chunk = ((chunk + 31) // 32) * 32      # round up to 32 rows
            if chunk < rows:
                return chunk
    # Single TC (v5e/v6e) or tiny tensor: one full-array block. Splitting only
    # adds per-step overhead and shrinks the tile below the efficiency knee.
    return rows


def quantized_activation(x: jax.Array,
                         quantize_train: bool = True,
                         quantize_eval: bool = True,
                         training: bool = False,
                         *,
                         min_pallas_elems: int = 1 << 19,
                         donate_input: bool = False) -> jax.Array:
    """Forward of QuantizedActivation (error_model=None)."""
    check_q = (quantize_train and training) or \
              (quantize_eval and not training) or \
              (quantize_train and quantize_eval)
    if not check_q:
        return x

    orig_shape = x.shape
    orig_dtype = x.dtype
    n = x.size
    one = jnp.ones((), dtype=orig_dtype)

    # Prefer the plain jnp.where path when the op is small enough for XLA to
    # fuse with its producer/consumer, or when the element count is not a
    # multiple of 128: padding + re-slicing around a standalone kernel would
    # roughly triple HBM traffic for a purely bandwidth-bound op.
    if n == 0 or n < min_pallas_elems or n % _LANE != 0:
        return jnp.where(x >= 0, one, -one)

    rows = n // _LANE
    slab = x.reshape(rows, _LANE)  # lane-dense, no pad pass

    itemsize = jnp.dtype(orig_dtype).itemsize
    target_bytes, num_tc, vmem_limit = _chip_policy()
    tile_rows = _choose_tile_rows(rows, itemsize, target_bytes, num_tc)
    grid = pl.cdiv(rows, tile_rows)  # ragged last block is masked by Pallas

    out = pl.pallas_call(
        _quantize_kernel,
        out_shape=jax.ShapeDtypeStruct((rows, _LANE), orig_dtype),
        grid=(grid,),
        in_specs=[pl.BlockSpec((tile_rows, _LANE), lambda i: (i, 0))],
        out_specs=pl.BlockSpec((tile_rows, _LANE), lambda i: (i, 0)),
        # Reuse the input HBM buffer for the output when the caller promises
        # not to read x afterwards (saves an allocation, not bandwidth). Only
        # the lane-aligned path reaches here, so the alias targets the actual
        # input buffer rather than a padded temporary.
        input_output_aliases=({0: 0} if donate_input else {}),
        cost_estimate=pl.CostEstimate(
            flops=n, transcendentals=0, bytes_accessed=2 * n * itemsize),
        compiler_params=pltpu.CompilerParams(
            dimension_semantics=("parallel",),
            vmem_limit_bytes=vmem_limit),
    )(slab)

    return out.reshape(orig_shape)


if __name__ == "__main__":
    key = jax.random.PRNGKey(0)
    k1, k2, k3 = jax.random.split(key, 3)

    def _ref(x):
        one = jnp.ones((), dtype=x.dtype)
        return jnp.where(x >= 0, one, -one)

    # 1) Small NCHW activation, forced through the Pallas path (single block).
    x1 = jax.random.normal(k1, (2, 4, 16, 16), dtype=jnp.float32)
    y1 = jax.block_until_ready(quantized_activation(x1, min_pallas_elems=0))
    assert y1.shape == x1.shape and y1.dtype == x1.dtype
    assert bool(jnp.all(y1 == _ref(x1)))

    # 2) Larger lane-aligned activation, forced through the Pallas path
    #    (splits into a multi-step grid on multi-TC chips).
    x2 = jax.random.normal(k2, (2, 16, 32, 32), dtype=jnp.float32)
    y2 = jax.block_until_ready(quantized_activation(x2, min_pallas_elems=0))
    assert y2.shape == x2.shape and y2.dtype == x2.dtype
    assert bool(jnp.all(y2 == _ref(x2)))

    # 3) Non-multiple-of-128 size: takes the fused jnp.where path (no pad/slice
    #    round trips around a standalone kernel).
    x3 = jax.random.normal(k3, (3, 5, 7), dtype=jnp.float32)
    y3 = jax.block_until_ready(quantized_activation(x3))
    assert y3.shape == x3.shape and y3.dtype == x3.dtype
    assert bool(jnp.all(y3 == _ref(x3)))

    print("KERNEL_OK")
</pallas_src>

<mosaic_0001>
module attributes {stable_mosaic.version = 11 : i64} {
  func.func @_quantize_kernel(%arg0: i32, %arg1: memref<16x128xf32, #tpu.memory_space<vmem>>, %arg2: memref<16x128xf32, #tpu.memory_space<vmem>>) attributes {dimension_semantics = [#tpu.dimension_semantics<parallel>], iteration_bounds = array<i64: 1>, scalar_prefetch = 0 : i64, scratch_operands = 0 : i64, tpu.core_type = #tpu.core_type<tc>, window_params = [{transform_indices = @transform_0, window_bounds = array<i64: 16, 128>}, {transform_indices = @transform_1, window_bounds = array<i64: 16, 128>}]} {
    %c0 = arith.constant 0 : index
    %c0_0 = arith.constant 0 : index
    %0 = vector.load %arg1[%c0, %c0_0] : memref<16x128xf32, #tpu.memory_space<vmem>>, vector<16x128xf32>
    %cst = arith.constant 0.000000e+00 : f32
    %1 = vector.broadcast %cst : f32 to vector<16x128xf32>
    %2 = arith.cmpf oge, %0, %1 : vector<16x128xf32>
    %cst_1 = arith.constant 0.000000e+00 : f32
    %cst_2 = arith.constant 1.000000e+00 : f32
    %3 = arith.subf %cst_1, %cst_2 : f32
    %cst_3 = arith.constant 1.000000e+00 : f32
    %4 = vector.broadcast %cst_3 : f32 to vector<16x128xf32>
    %5 = vector.broadcast %3 : f32 to vector<16x128xf32>
    %6 = arith.select %2, %4, %5 : vector<16x128xi1>, vector<16x128xf32>
    %c0_4 = arith.constant 0 : index
    %c0_5 = arith.constant 0 : index
    %7 = vector.load %arg2[%c0_4, %c0_5] : memref<16x128xf32, #tpu.memory_space<vmem>>, vector<16x128xf32>
    tpu.vector_store %arg2[%c0_4, %c0_5], %6 {strides = array<i32>} : memref<16x128xf32, #tpu.memory_space<vmem>>, vector<16x128xf32>,
    return
  }
  func.func @transform_0(%arg0: i32) -> (i32, i32) {
    %c0_i32 = arith.constant 0 : i32
    %c0_i32_0 = arith.constant 0 : i32
    return %arg0, %c0_i32 : i32, i32
  }
  func.func @transform_1(%arg0: i32) -> (i32, i32) {
    %c0_i32 = arith.constant 0 : i32
    %c0_i32_0 = arith.constant 0 : i32
    return %arg0, %c0_i32 : i32, i32
  }
}

</mosaic_0001>

<bundles_post_ra>
// kernel: tpu_custom_call.1
= control target key start
LH: loop header
LB: loop body
LE: loop exit
PB: predicated region body
PF: predicated region fallthrough
CT: control target
= control target key end

     0   :  { %6 = vsyncpa [#allocation3], 0  ;;  %s146_s0 = inlined_call_operand.hbm [shape: f32[16,128], index: 0, kind: input, shape index: {}]   ;;  %s147_s1 = inlined_call_operand.hbm [shape: f32[16,128], index: 1, kind: output, shape index: {}]  }
   0x1   :  { %7 = vsyncpa [#allocation4], 0  ;;  %s101_s6 = smov [#allocation2]   ;;  %s53_s10 = scalar_lea.hbm %s146_s0, 256 }
   0x2   :  { %s13_s7 = sshll.u32 %s101_s6, 4  ;;  %p54_p0 = scmp.ne.s32.totalorder %s146_s0, %s53_s10  ;;  %s14_s7 = int_to_ptr.vmem [resolvable:$true] %s13_s7 }
   0x3   :  { %p57_p1 = scmp.lt.u32.totalorder %s53_s10, %s146_s0 }
   0x5   :  { %p59_p2 = pnand %p57_p1, %p54_p0 }
   0x7   :  { %62 = shalt.err (!%p59_p2)
}
   0x8   :  { %s63_s15 = scalar_lea.vmem %s14_s7, 256  ;;  %p68_p4 = scmp.lt.s32.totalorder %s14_s7, %s14_s7 }
   0x9   :  { %p64_p3 = scmp.ne.s32.totalorder %s14_s7, %s63_s15  ;;  %p69_p5 = scmp.lt.s32.totalorder %s63_s15, %s63_s15 }
   0xb   :  { %p70_p6 = por %p69_p5, %p68_p4 }
   0xd   :  { %p71_p7 = pnand %p70_p6, %p64_p3 }
   0xf   :  { %74 = shalt.err (!%p71_p7)
}
  0x10   :  { %s102_s16 = smov 128   ;;  %s103_s17 = smov 8  }
  0x11   :  { %19 = dma.hbm_to_vmem [thread:$0]  %s146_s0, 256, %s14_s7, [#allocation3], %s102_s16, %s102_s16, %s103_s17  }
  0x12   :  { %97 = dma.done.wait [#allocation3], 256  }
  0x13   :  { %98 = vsyncadd [#allocation3], 4294967040  ;;  %s104_s20 = smov [#allocation5]   ;;  %v23_v0 = vld [vmem:[#allocation2] sm:$0xff]  ;;  %v24_v1 = vld [vmem:[#allocation2 + $0x8] sm:$0xff]  ;;  %v105_v2 = vmov -1.0  }
  0x14   :  { %s36_s21 = sshll.u32 %s104_s20, 4  ;;  %vm25_vm0 = vcmp.ge.f32.partialorder %v23_v0, 0.0  ;;  %vm26_vm1 = vcmp.ge.f32.partialorder %v24_v1, 0.0  ;;  %s37_s21 = int_to_ptr.vmem [resolvable:$true] %s36_s21 }
  0x15   :  { %v27_v3 = vsel %vm25_vm0, 1.0, %v105_v2  ;;  %v28_v4 = vsel %vm26_vm1, 1.0, %v105_v2  ;;  %s75_s22 = scalar_lea.vmem %s37_s21, 256  ;;  %p80_p9 = scmp.lt.s32.totalorder %s37_s21, %s37_s21 }
  0x16   :  { %29 = vst [vmem:[#allocation5] sm:$0xff] %v27_v3  ;;  %30 = vst [vmem:[#allocation5 + $0x8] sm:$0xff] %v28_v4  ;;  %p76_p8 = scmp.ne.s32.totalorder %s37_s21, %s75_s22  ;;  %p81_p10 = scmp.lt.s32.totalorder %s75_s22, %s75_s22 }
  0x18   :  { %p82_p11 = por %p81_p10, %p80_p9 }
  0x1a   :  { %p83_p12 = pnand %p82_p11, %p76_p8 }
  0x1c   :  { %86 = shalt.err (!%p83_p12)
}
  0x1d   :  { %s87_s24 = scalar_lea.hbm %s147_s1, 256 }
  0x1e   :  { %p88_p13 = scmp.ne.s32.totalorder %s147_s1, %s87_s24  ;;  %p91_p0 = scmp.lt.u32.totalorder %s87_s24, %s147_s1 }
  0x20   :  { %p93_p1 = pnand %p91_p0, %p88_p13 }
  0x22   :  { %96 = shalt.err (!%p93_p1)
}
  0x23   :  { %42 = dma.vmem_to_hbm [thread:$0]  %s37_s21, 256, %s147_s1, [#allocation4], %s102_s16, %s102_s16, %s103_s17  }
  0x24   :  { %99 = dma.done.wait [#allocation4], 256  }
  0x25   :  { %100 = vsyncadd [#allocation4], 4294967040 }
  0x26   :  { %46 = vsyncpa [#allocation3], 1 }
  0x27   :  { %47 = vsyncpa [#allocation4], 1 }

</bundles_post_ra>
